<compile_context>
chip_gen: v7x
topology: tpu7x:2x2x1
jax: 0.10.0
libtpu: 0.0.40
codegen_flags: <defaults>
</compile_context>

<pallas_src>
import functools
import math

import jax
import jax.numpy as jnp
from jax.experimental import pallas as pl
from jax.experimental.pallas import tpu as pltpu

_INV_SQRT2 = 1.0 / math.sqrt(2.0)


def _round_up(v, m):
    return (v + m - 1) // m * m


def _vmem_capacity_bytes():
    """Per-TensorCore VMEM capacity; conservative fallback = 64 MiB (v7x)."""
    try:
        cap = int(getattr(pltpu.get_tpu_info(), "vmem_capacity_bytes"))
        if cap > 0:
            return cap
    except Exception:
        pass
    return 64 << 20


def _spec(shape, index_map, *, buffers=None):
    """BlockSpec, optionally with an explicit pipeline buffer count.

    Resident operands (constant index_map) use buffers=1 so the second pipeline
    buffer is not wasted. Falls back to a plain BlockSpec if this JAX version's
    BlockSpec does not accept `pipeline_mode`.
    """
    if buffers is not None:
        try:
            return pl.BlockSpec(shape, index_map, pipeline_mode=pl.Buffered(buffers))
        except (TypeError, AttributeError):
            pass
    return pl.BlockSpec(shape, index_map)


def _pick_tm(tm_req, tm_cap, M):
    """Row tile: requested, clamped by the VMEM-derived cap and the row count."""
    tm = max(min(tm_req, tm_cap), 16)
    if tm >= 256:
        tm = (tm // 256) * 256          # full MXU passes for bf16 on 256-wide arrays
    else:
        tm = max((tm // 16) * 16, 16)   # sublane-pack safe for f32 and bf16
    tm = min(tm, _round_up(M, 16))
    return int(tm)


# ----------------------------- kernels --------------------------------------


def _mlp_resident_kernel(x_ref, w1_ref, b1_ref, w2_ref, b2_ref, o_ref):
    # x_ref:  (tm, C_in_p)
    # w1_ref: (C_in_p, C_mlp_p), b1_ref: (1, C_mlp_p)  [resident]
    # w2_ref: (C_mlp_p, C_in_p), b2_ref: (1, C_in_p)   [resident]
    x = x_ref[...]

    # fc1 — native-dtype operands, f32 accumulation on the MXU.
    h = jnp.dot(x, w1_ref[...], preferred_element_type=jnp.float32)
    h = h + b1_ref[...].astype(jnp.float32)

    # exact GELU (torch.nn.GELU default): 0.5 * x * (1 + erf(x / sqrt(2)))
    h = 0.5 * h * (1.0 + jax.lax.erf(h * _INV_SQRT2))

    # dropout (eval mode) -> identity

    # fc2 — cast intermediate back to weight dtype (keeps bf16 MXU path).
    w2 = w2_ref[...]
    y = jnp.dot(h.astype(w2.dtype), w2, preferred_element_type=jnp.float32)
    y = y + b2_ref[...].astype(jnp.float32)

    # dropout (eval mode) -> identity
    o_ref[...] = y.astype(o_ref.dtype)


def _mlp_stream_kernel(x_ref, w1_ref, b1_ref, w2_ref, b2_ref, o_ref, acc_ref):
    # Hidden-dim streaming: grid = (row tiles, hidden blocks); hidden axis last.
    # x_ref:  (tm, C_in_p)          (same block across k)
    # w1_ref: (C_in_p, tk), b1_ref: (1, tk)   (hidden block k)
    # w2_ref: (tk, C_in_p), b2_ref: (1, C_in_p)
    # acc_ref: (tm, C_in_p) f32 scratch
    k = pl.program_id(1)

    @pl.when(k == 0)
    def _():
        acc_ref[...] = jnp.zeros_like(acc_ref)

    h = jnp.dot(x_ref[...], w1_ref[...], preferred_element_type=jnp.float32)
    h = h + b1_ref[...].astype(jnp.float32)
    h = 0.5 * h * (1.0 + jax.lax.erf(h * _INV_SQRT2))  # GELU is elementwise per block

    w2 = w2_ref[...]
    acc_ref[...] += jnp.dot(h.astype(w2.dtype), w2,
                            preferred_element_type=jnp.float32)

    @pl.when(k == pl.num_programs(1) - 1)
    def _():
        o_ref[...] = (acc_ref[...] + b2_ref[...].astype(jnp.float32)).astype(o_ref.dtype)


# ----------------------------- wrappers -------------------------------------


def prepare_mlp_params(w1, b1, w2, b2):
    """Pad channel dims to lane multiples (128) and cast biases to f32.

    Call ONCE at parameter init/load time — this hoists the weight re-padding
    (a full HBM pass over the weights) out of the per-forward-call path.
    """
    C_in, C_mlp = w1.shape
    C_in_p = _round_up(C_in, 128)
    C_mlp_p = _round_up(C_mlp, 128)
    w1_p = jnp.pad(w1, ((0, C_in_p - C_in), (0, C_mlp_p - C_mlp)))
    w2_p = jnp.pad(w2, ((0, C_mlp_p - C_mlp), (0, C_in_p - C_in)))
    b1_p = jnp.pad(b1.astype(jnp.float32).reshape(1, C_mlp),
                   ((0, 0), (0, C_mlp_p - C_mlp)))
    b2_p = jnp.pad(b2.astype(jnp.float32).reshape(1, C_in),
                   ((0, 0), (0, C_in_p - C_in)))
    return w1_p, b1_p, w2_p, b2_p


@functools.partial(jax.jit, static_argnames=("tm", "force_stream"))
def mlp_pallas(x, w1_p, b1_p, w2_p, b2_p, *, tm=512, force_stream=False):
    """x: (B, N, C_in); returns (B, N, C_in).

    Weights/biases should be pre-padded with prepare_mlp_params (then the pads
    below are zero-width no-ops). Unpadded params still work correctly.
    """
    B, N, C_in = x.shape
    M = B * N

    Cw_in, Cw_mlp = w1_p.shape
    if Cw_in < C_in:
        raise ValueError("fc1 weight has fewer input channels than x")
    C_in_p = _round_up(max(Cw_in, C_in), 128)
    C_mlp_p = _round_up(Cw_mlp, 128)

    # No-op pads when params came from prepare_mlp_params. Zero-padding is
    # mathematically transparent (GELU(0)=0; zero weight rows/cols contribute 0).
    w1_p = jnp.pad(w1_p, ((0, C_in_p - Cw_in), (0, C_mlp_p - Cw_mlp)))
    w2_p = jnp.pad(w2_p, ((0, C_mlp_p - w2_p.shape[0]), (0, C_in_p - w2_p.shape[1])))
    b1_p = jnp.pad(b1_p.reshape(1, -1).astype(jnp.float32),
                   ((0, 0), (0, C_mlp_p - b1_p.size)))
    b2_p = jnp.pad(b2_p.reshape(1, -1).astype(jnp.float32),
                   ((0, 0), (0, C_in_p - b2_p.size)))

    x_itemsize = jnp.dtype(x.dtype).itemsize
    w_itemsize = jnp.dtype(w1_p.dtype).itemsize
    cast_bytes = 0 if w_itemsize == 4 else w_itemsize  # fc2 cast copy of h

    # Chip-aware per-TensorCore VMEM budget (each TC holds its own weight copy
    # when the row axis is megacore-sharded).
    budget = int(0.8 * _vmem_capacity_bytes())
    headroom = 8 << 20

    weights_resident = 2 * C_in_p * C_mlp_p * w_itemsize   # w1 + w2, Buffered(1)
    biases_resident = (C_in_p + C_mlp_p) * 4

    per_row_res = (4 * C_in_p * x_itemsize          # x + out tiles, double-buffered
                   + C_mlp_p * (4 + cast_bytes))    # f32 intermediate h (+ cast copy)
    tm_cap_res = (budget - headroom - weights_resident - biases_resident) // per_row_res

    use_stream = (force_stream
                  or weights_resident > int(0.45 * budget)
                  or tm_cap_res < 128)

    if not use_stream:
        # ----- resident-weight path: 1-D row-tiled grid -----
        tm_eff = _pick_tm(tm, tm_cap_res, M)
        M_p = _round_up(M, tm_eff)
        x2 = jnp.pad(x.reshape(M, C_in), ((0, M_p - M), (0, C_in_p - C_in)))

        needed = weights_resident + biases_resident + tm_eff * per_row_res
        vmem_limit = int(min(max(needed + headroom, 32 << 20), budget))

        out = pl.pallas_call(
            _mlp_resident_kernel,
            out_shape=jax.ShapeDtypeStruct((M_p, C_in_p), x.dtype),
            grid_spec=pltpu.PrefetchScalarGridSpec(
                num_scalar_prefetch=0,
                grid=(M_p // tm_eff,),
                in_specs=[
                    pl.BlockSpec((tm_eff, C_in_p), lambda i: (i, 0)),          # x tile
                    _spec((C_in_p, C_mlp_p), lambda i: (0, 0), buffers=1),     # w1 (resident)
                    _spec((1, C_mlp_p), lambda i: (0, 0), buffers=1),          # b1
                    _spec((C_mlp_p, C_in_p), lambda i: (0, 0), buffers=1),     # w2 (resident)
                    _spec((1, C_in_p), lambda i: (0, 0), buffers=1),           # b2
                ],
                out_specs=pl.BlockSpec((tm_eff, C_in_p), lambda i: (i, 0)),
            ),
            compiler_params=pltpu.CompilerParams(
                dimension_semantics=("parallel",),
                vmem_limit_bytes=vmem_limit,
            ),
        )(x2, w1_p, b1_p, w2_p, b2_p)
    else:
        # ----- hidden-dim streaming path: 2-D grid with f32 accumulator -----
        tk = 512 if C_mlp_p % 512 == 0 else (256 if C_mlp_p % 256 == 0 else 128)
        blocks_stream = (2 * 2 * C_in_p * tk * w_itemsize   # w1/w2 blocks, double-buffered
                         + 2 * tk * 4                       # b1 block, double-buffered
                         + C_in_p * 4)                      # b2 (resident)
        per_row_stream = (4 * C_in_p * x_itemsize           # x + out tiles, double-buffered
                          + C_in_p * 4                      # f32 accumulator scratch
                          + tk * (4 + cast_bytes))          # f32 h block (+ cast copy)
        tm_cap_s = (budget - headroom - blocks_stream) // per_row_stream
        tm_eff = _pick_tm(tm, tm_cap_s, M)
        M_p = _round_up(M, tm_eff)
        x2 = jnp.pad(x.reshape(M, C_in), ((0, M_p - M), (0, C_in_p - C_in)))

        needed = blocks_stream + tm_eff * per_row_stream
        vmem_limit = int(min(max(needed + headroom, 32 << 20), budget))

        out = pl.pallas_call(
            _mlp_stream_kernel,
            out_shape=jax.ShapeDtypeStruct((M_p, C_in_p), x.dtype),
            grid_spec=pltpu.PrefetchScalarGridSpec(
                num_scalar_prefetch=0,
                grid=(M_p // tm_eff, C_mlp_p // tk),
                in_specs=[
                    pl.BlockSpec((tm_eff, C_in_p), lambda i, k: (i, 0)),       # x tile
                    pl.BlockSpec((C_in_p, tk), lambda i, k: (0, k)),           # w1 block
                    pl.BlockSpec((1, tk), lambda i, k: (0, k)),                # b1 block
                    pl.BlockSpec((tk, C_in_p), lambda i, k: (k, 0)),           # w2 block
                    _spec((1, C_in_p), lambda i, k: (0, 0), buffers=1),        # b2
                ],
                out_specs=pl.BlockSpec((tm_eff, C_in_p), lambda i, k: (i, 0)),
                scratch_shapes=[pltpu.VMEM((tm_eff, C_in_p), jnp.float32)],
            ),
            compiler_params=pltpu.CompilerParams(
                dimension_semantics=("parallel", "arbitrary"),
                vmem_limit_bytes=vmem_limit,
            ),
        )(x2, w1_p, b1_p, w2_p, b2_p)

    return out[:M, :C_in].reshape(B, N, C_in)


def init_mlp_params(key, in_channel, mlp_channel, dtype=jnp.float32):
    """Deterministic init matching the PyTorch module's _init_weights.

    Tip: pass dtype=jnp.bfloat16 on v6e/v7x for full MXU throughput (f32
    accumulation is kept via preferred_element_type inside the kernel).
    """
    k1, k2, k3, k4 = jax.random.split(key, 4)
    bound1 = math.sqrt(6.0 / (in_channel + mlp_channel))
    bound2 = math.sqrt(6.0 / (mlp_channel + in_channel))
    # stored as (in, out) so the kernel computes x @ W
    w1 = jax.random.uniform(k1, (in_channel, mlp_channel), dtype,
                            minval=-bound1, maxval=bound1)
    w2 = jax.random.uniform(k2, (mlp_channel, in_channel), dtype,
                            minval=-bound2, maxval=bound2)
    b1 = (1e-6 * jax.random.normal(k3, (mlp_channel,))).astype(dtype)
    b2 = (1e-6 * jax.random.normal(k4, (in_channel,))).astype(dtype)
    return w1, b1, w2, b2


def mlp_reference(x, w1, b1, w2, b2):
    """Pure-JAX reference for correctness check."""
    h = jnp.einsum("bnc,cm->bnm", x, w1) + b1
    h = 0.5 * h * (1.0 + jax.lax.erf(h * _INV_SQRT2))
    y = jnp.einsum("bnm,mc->bnc", h, w2) + b2
    return y


if __name__ == "__main__":
    key = jax.random.PRNGKey(0)
    kx1, kp1, kx2, kp2, kx3, kp3 = jax.random.split(key, 6)

    # --- small case matching the module spec (channels not lane-aligned) ---
    B, N, C_in, C_mlp = 2, 8, 16, 32
    x = jax.random.normal(kx1, (B, N, C_in), dtype=jnp.float32)
    w1, b1, w2, b2 = init_mlp_params(kp1, C_in, C_mlp)
    params = prepare_mlp_params(w1, b1, w2, b2)   # pad ONCE, outside the hot path
    out = jax.block_until_ready(mlp_pallas(x, *params))
    ref = mlp_reference(x, w1, b1, w2, b2)
    assert out.shape == (B, N, C_in)
    assert jnp.allclose(out, ref, atol=1e-5, rtol=1e-5), "mismatch (small case)"

    # --- larger, lane-aligned case exercising the row-tiled resident path ---
    B2, N2, C_in2, C_mlp2 = 2, 512, 128, 256
    x2 = jax.random.normal(kx2, (B2, N2, C_in2), dtype=jnp.float32)
    w1_2, b1_2, w2_2, b2_2 = init_mlp_params(kp2, C_in2, C_mlp2)
    p2 = prepare_mlp_params(w1_2, b1_2, w2_2, b2_2)
    out2 = jax.block_until_ready(mlp_pallas(x2, *p2))
    ref2 = mlp_reference(x2, w1_2, b1_2, w2_2, b2_2)
    assert out2.shape == (B2, N2, C_in2)
    assert jnp.allclose(out2, ref2, atol=1e-4, rtol=1e-4), "mismatch (tiled case)"

    # --- hidden-dim streaming path (forced; chosen automatically for big C_mlp) ---
    B3, N3, C_in3, C_mlp3 = 2, 256, 128, 1024
    x3 = jax.random.normal(kx3, (B3, N3, C_in3), dtype=jnp.float32)
    w1_3, b1_3, w2_3, b2_3 = init_mlp_params(kp3, C_in3, C_mlp3)
    p3 = prepare_mlp_params(w1_3, b1_3, w2_3, b2_3)
    out3 = jax.block_until_ready(mlp_pallas(x3, *p3, force_stream=True))
    ref3 = mlp_reference(x3, w1_3, b1_3, w2_3, b2_3)
    assert out3.shape == (B3, N3, C_in3)
    assert jnp.allclose(out3, ref3, atol=5e-4, rtol=5e-4), "mismatch (stream case)"

    print("KERNEL_OK")
</pallas_src>

<mosaic_0001>
module attributes {stable_mosaic.version = 11 : i64} {
  func.func @_mlp_resident_kernel(%arg0: i32, %arg1: memref<16x128xf32, #tpu.memory_space<vmem>>, %arg2: memref<128x128xf32, #tpu.memory_space<vmem>>, %arg3: memref<1x128xf32, #tpu.memory_space<vmem>>, %arg4: memref<128x128xf32, #tpu.memory_space<vmem>>, %arg5: memref<1x128xf32, #tpu.memory_space<vmem>>, %arg6: memref<16x128xf32, #tpu.memory_space<vmem>>) attributes {dimension_semantics = [#tpu.dimension_semantics<parallel>], iteration_bounds = array<i64: 1>, scalar_prefetch = 0 : i64, scratch_operands = 0 : i64, tpu.core_type = #tpu.core_type<tc>, window_params = [{transform_indices = @transform_0, window_bounds = array<i64: 16, 128>}, {pipeline_mode = #tpu.pipeline_mode<synchronous>, transform_indices = @transform_1, window_bounds = array<i64: 128, 128>}, {pipeline_mode = #tpu.pipeline_mode<synchronous>, transform_indices = @transform_2, window_bounds = array<i64: 1, 128>}, {pipeline_mode = #tpu.pipeline_mode<synchronous>, transform_indices = @transform_3, window_bounds = array<i64: 128, 128>}, {pipeline_mode = #tpu.pipeline_mode<synchronous>, transform_indices = @transform_4, window_bounds = array<i64: 1, 128>}, {transform_indices = @transform_5, window_bounds = array<i64: 16, 128>}]} {
    %c0 = arith.constant 0 : index
    %c0_0 = arith.constant 0 : index
    %0 = vector.load %arg1[%c0, %c0_0] : memref<16x128xf32, #tpu.memory_space<vmem>>, vector<16x128xf32>
    %c0_1 = arith.constant 0 : index
    %c0_2 = arith.constant 0 : index
    %1 = vector.load %arg2[%c0_1, %c0_2] : memref<128x128xf32, #tpu.memory_space<vmem>>, vector<128x128xf32>
    %cst = arith.constant dense<0.000000e+00> : vector<16x128xf32>
    %2 = tpu.matmul %0, %1, %cst {dimension_numbers = #tpu.dot_dimension_numbers<[1], [0], [0], [1], [0, 0, 1, 1], [], []>} : vector<16x128xf32>, vector<128x128xf32>, vector<16x128xf32> -> vector<16x128xf32>
    %c0_3 = arith.constant 0 : index
    %c0_4 = arith.constant 0 : index
    %3 = vector.load %arg3[%c0_3, %c0_4] : memref<1x128xf32, #tpu.memory_space<vmem>>, vector<1x128xf32>
    %4 = vector.broadcast %3 : vector<1x128xf32> to vector<16x128xf32>
    %5 = arith.addf %2, %4 : vector<16x128xf32>
    %cst_5 = arith.constant 5.000000e-01 : f32
    %6 = vector.broadcast %cst_5 : f32 to vector<16x128xf32>
    %7 = arith.mulf %6, %5 : vector<16x128xf32>
    %cst_6 = arith.constant 0.707106769 : f32
    %8 = vector.broadcast %cst_6 : f32 to vector<16x128xf32>
    %9 = arith.mulf %5, %8 : vector<16x128xf32>
    %10 = math.erf %9 : vector<16x128xf32>
    %cst_7 = arith.constant 1.000000e+00 : f32
    %11 = vector.broadcast %cst_7 : f32 to vector<16x128xf32>
    %12 = arith.addf %11, %10 : vector<16x128xf32>
    %13 = arith.mulf %7, %12 : vector<16x128xf32>
    %c0_8 = arith.constant 0 : index
    %c0_9 = arith.constant 0 : index
    %14 = vector.load %arg4[%c0_8, %c0_9] : memref<128x128xf32, #tpu.memory_space<vmem>>, vector<128x128xf32>
    %cst_10 = arith.constant dense<0.000000e+00> : vector<16x128xf32>
    %15 = tpu.matmul %13, %14, %cst_10 {dimension_numbers = #tpu.dot_dimension_numbers<[1], [0], [0], [1], [0, 0, 1, 1], [], []>} : vector<16x128xf32>, vector<128x128xf32>, vector<16x128xf32> -> vector<16x128xf32>
    %c0_11 = arith.constant 0 : index
    %c0_12 = arith.constant 0 : index
    %16 = vector.load %arg5[%c0_11, %c0_12] : memref<1x128xf32, #tpu.memory_space<vmem>>, vector<1x128xf32>
    %17 = vector.broadcast %16 : vector<1x128xf32> to vector<16x128xf32>
    %18 = arith.addf %15, %17 : vector<16x128xf32>
    %c0_13 = arith.constant 0 : index
    %c0_14 = arith.constant 0 : index
    %19 = vector.load %arg6[%c0_13, %c0_14] : memref<16x128xf32, #tpu.memory_space<vmem>>, vector<16x128xf32>
    tpu.vector_store %arg6[%c0_13, %c0_14], %18 {strides = array<i32>} : memref<16x128xf32, #tpu.memory_space<vmem>>, vector<16x128xf32>,
    return
  }
  func.func @transform_0(%arg0: i32) -> (i32, i32) {
    %c0_i32 = arith.constant 0 : i32
    %c0_i32_0 = arith.constant 0 : i32
    return %arg0, %c0_i32 : i32, i32
  }
  func.func @transform_1(%arg0: i32) -> (i32, i32) {
    %c0_i32 = arith.constant 0 : i32
    %c0_i32_0 = arith.constant 0 : i32
    %c0_i32_1 = arith.constant 0 : i32
    return %c0_i32, %c0_i32_0 : i32, i32
  }
  func.func @transform_2(%arg0: i32) -> (i32, i32) {
    %c0_i32 = arith.constant 0 : i32
    %c0_i32_0 = arith.constant 0 : i32
    %c0_i32_1 = arith.constant 0 : i32
    return %c0_i32, %c0_i32_0 : i32, i32
  }
  func.func @transform_3(%arg0: i32) -> (i32, i32) {
    %c0_i32 = arith.constant 0 : i32
    %c0_i32_0 = arith.constant 0 : i32
    %c0_i32_1 = arith.constant 0 : i32
    return %c0_i32, %c0_i32_0 : i32, i32
  }
  func.func @transform_4(%arg0: i32) -> (i32, i32) {
    %c0_i32 = arith.constant 0 : i32
    %c0_i32_0 = arith.constant 0 : i32
    %c0_i32_1 = arith.constant 0 : i32
    return %c0_i32, %c0_i32_0 : i32, i32
  }
  func.func @transform_5(%arg0: i32) -> (i32, i32) {
    %c0_i32 = arith.constant 0 : i32
    %c0_i32_0 = arith.constant 0 : i32
    return %arg0, %c0_i32 : i32, i32
  }
}

</mosaic_0001>

<bundles_post_ra>
// kernel: mlp_pallas.1
= control target key start
LH: loop header
LB: loop body
LE: loop exit
PB: predicated region body
PF: predicated region fallthrough
CT: control target
= control target key end

     0   :  { %10 = vsyncpa [#allocation3], 0  ;;  %s568_s0 = inlined_call_operand.vmem [shape: f32[16,128], index: 0, kind: input, shape index: {}]   ;;  %s569_s1 = inlined_call_operand.hbm [shape: f32[128,128], index: 1, kind: input, shape index: {}]   ;;  %s570_s2 = inlined_call_operand.vmem [shape: f32[1,128], index: 2, kind: input, shape index: {}]   ;;  %s571_s3 = inlined_call_operand.hbm [shape: f32[128,128], index: 3, kind: input, shape index: {}]   ;;  %s572_s4 = inlined_call_operand.vmem [shape: f32[1,128], index: 4, kind: input, shape index: {}]   ;;  %s573_s5 = inlined_call_operand.vmem [shape: f32[16,128], index: 5, kind: output, shape index: {}]  }
   0x1   :  { %11 = vsyncpa [#allocation5], 0  ;;  %s492_s18 = smov [#allocation2]   ;;  %s444_s22 = scalar_lea.hbm %s569_s1, 2048 }
   0x2   :  { %s19_s19 = sshll.u32 %s492_s18, 4  ;;  %p445_p0 = scmp.ne.s32.totalorder %s569_s1, %s444_s22  ;;  %s20_s19 = int_to_ptr.vmem [resolvable:$true] %s19_s19 }
   0x3   :  { %p448_p1 = scmp.lt.u32.totalorder %s444_s22, %s569_s1 }
   0x5   :  { %p450_p2 = pnand %p448_p1, %p445_p0 }
   0x7   :  { %453 = shalt.err (!%p450_p2)
}
   0x8   :  { %s454_s27 = scalar_lea.vmem %s20_s19, 2048  ;;  %p459_p4 = scmp.lt.s32.totalorder %s20_s19, %s20_s19 }
   0x9   :  { %p455_p3 = scmp.ne.s32.totalorder %s20_s19, %s454_s27  ;;  %p460_p5 = scmp.lt.s32.totalorder %s454_s27, %s454_s27 }
   0xb   :  { %p461_p6 = por %p460_p5, %p459_p4 }
   0xd   :  { %p462_p7 = pnand %p461_p6, %p455_p3 }
   0xf   :  { %465 = shalt.err (!%p462_p7)
}
  0x10   :  { %s493_s28 = smov 128   ;;  %s494_s29 = smov 8  }
  0x11   :  { %25 = dma.hbm_to_vmem [thread:$0]  %s569_s1, 2048, %s20_s19, [#allocation3], %s493_s28, %s493_s28, %s494_s29  }
  0x12   :  { %s495_s7 = smov [#allocation4]   ;;  %s466_s11 = scalar_lea.hbm %s571_s3, 2048 }
  0x13   :  { %s33_s8 = sshll.u32 %s495_s7, 4  ;;  %p467_p8 = scmp.ne.s32.totalorder %s571_s3, %s466_s11  ;;  %s34_s8 = int_to_ptr.vmem [resolvable:$true] %s33_s8 }
  0x14   :  { %p470_p9 = scmp.lt.u32.totalorder %s466_s11, %s571_s3 }
  0x16   :  { %p472_p10 = pnand %p470_p9, %p467_p8 }
  0x18   :  { %475 = shalt.err (!%p472_p10)
}
  0x19   :  { %s476_s16 = scalar_lea.vmem %s34_s8, 2048  ;;  %p481_p12 = scmp.lt.s32.totalorder %s34_s8, %s34_s8 }
  0x1a   :  { %p477_p11 = scmp.ne.s32.totalorder %s34_s8, %s476_s16  ;;  %p482_p13 = scmp.lt.s32.totalorder %s476_s16, %s476_s16 }
  0x1c   :  { %p483_p0 = por %p482_p13, %p481_p12 }
  0x1e   :  { %p484_p1 = pnand %p483_p0, %p477_p11 }
  0x20   :  { %487 = shalt.err (!%p484_p1)
}
  0x21   :  { %39 = dma.hbm_to_vmem [thread:$0]  %s571_s3, 2048, %s34_s8, [#allocation5], %s493_s28, %s493_s28, %s494_s29  }
  0x22   :  { %488 = dma.done.wait [#allocation3], 2048  }
  0x23   :  { %489 = vsyncadd [#allocation3], 4294965248 }
  0x24   :  { %490 = dma.done.wait [#allocation5], 2048  }
  0x25   :  { %491 = vsyncadd [#allocation5], 4294965248  ;;  %v50_v0 = vld [vmem:[#allocation2] sm:$0xff]  ;;  %v51_v1 = vld [vmem:[#allocation2 + $0x8] sm:$0xff] }
  0x26   :  { %v52_v2 = vld [vmem:[#allocation2 + $0x10] sm:$0xff]  ;;  %v372_v3 = vpack.c.bf16 %v51_v1, %v50_v0  ;;  %v53_v4 = vld [vmem:[#allocation2 + $0x18] sm:$0xff]  ;;  %v54_v6 = vld [vmem:[#allocation2 + $0x20] sm:$0xff] }
  0x27   :  { %v376_v5 = vpack.c.bf16 %v53_v4, %v52_v2  ;;  %v55_v7 = vld [vmem:[#allocation2 + $0x28] sm:$0xff]  ;;  %v56_v9 = vld [vmem:[#allocation2 + $0x30] sm:$0xff]  ;;  %v57_v10 = vld [vmem:[#allocation2 + $0x38] sm:$0xff] }
  0x28   :  { %373 = vmatprep.subr.bf16.mxu0 %v372_v3  ;;  %v380_v8 = vpack.c.bf16 %v55_v7, %v54_v6  ;;  %v48_v11 = vld [vmem:[%s568_s0] sm:$0xff]  ;;  %v159_v13 = vld [vmem:[#allocation4 + $0x8] sm:$0xff]  ;;  %v160_v14 = vld [vmem:[#allocation4 + $0x10] sm:$0xff]  ;;  %v384_v20 = vpack.c.bf16 %v57_v10, %v56_v9 }
  0x29   :  { %375 = vmatpush3.bf16.msra.mxu0 %v372_v3  ;;  %334 = vmatprep.mubr.f32.mxu0 %v48_v11  ;;  %v158_v12 = vld [vmem:[#allocation4] sm:$0xff]  ;;  %v161_v16 = vld [vmem:[#allocation4 + $0x18] sm:$0xff]  ;;  %v163_v19 = vld [vmem:[#allocation4 + $0x28] sm:$0xff] }
  0x2a   :  { %377 = vmatprep.subr.bf16.mxu0 %v376_v5  ;;  %v404_v15 = vpack.c.bf16 %v159_v13, %v158_v12  ;;  %v408_v17 = vpack.c.bf16 %v161_v16, %v160_v14  ;;  %v162_v18 = vld [vmem:[#allocation4 + $0x20] sm:$0xff]  ;;  %v59_v22 = vld [vmem:[#allocation2 + $0x48] sm:$0xff]  ;;  %v60_v25 = vld [vmem:[#allocation2 + $0x50] sm:$0xff] }
  0x2b   :  { %v58_v21 = vld [vmem:[#allocation2 + $0x40] sm:$0xff]  ;;  %v412_v23 = vpack.c.bf16 %v163_v19, %v162_v18  ;;  %v61_v26 = vld [vmem:[#allocation2 + $0x58] sm:$0xff]  ;;  %v63_v29 = vld [vmem:[#allocation2 + $0x68] sm:$0xff] }
  0x2c   :  { %405 = vmatprep.subr.bf16.mxu1 %v404_v15  ;;  %v388_v24 = vpack.c.bf16 %v59_v22, %v58_v21  ;;  %v392_v27 = vpack.c.bf16 %v61_v26, %v60_v25  ;;  %v62_v28 = vld [vmem:[#allocation2 + $0x60] sm:$0xff]  ;;  %v64_v31 = vld [vmem:[#allocation2 + $0x70] sm:$0xff]  ;;  %v65_v32 = vld [vmem:[#allocation2 + $0x78] sm:$0xff] }
  0x2d   :  { %379 = vmatpush3.bf16.msra.mxu0 %v376_v5  ;;  %407 = vmatpush3.bf16.msra.mxu1 %v404_v15  ;;  %v396_v30 = vpack.c.bf16 %v63_v29, %v62_v28  ;;  %v400_v33 = vpack.c.bf16 %v65_v32, %v64_v31  ;;  %v49_v34 = vld [vmem:[%s568_s0 + $0x8] sm:$0xff]  ;;  %v164_v35 = vld [vmem:[#allocation4 + $0x30] sm:$0xff]  ;;  %v165_v36 = vld [vmem:[#allocation4 + $0x38] sm:$0xff] }
  0x2e   :  { %381 = vmatprep.subr.bf16.mxu0 %v380_v8  ;;  %409 = vmatprep.subr.bf16.mxu1 %v408_v17  ;;  %v416_v37 = vpack.c.bf16 %v165_v36, %v164_v35  ;;  %v166_v38 = vld [vmem:[#allocation4 + $0x40] sm:$0xff]  ;;  %v167_v39 = vld [vmem:[#allocation4 + $0x48] sm:$0xff]  ;;  %v168_v41 = vld [vmem:[#allocation4 + $0x50] sm:$0xff] }
  0x2f   :  { %v420_v40 = vpack.c.bf16 %v167_v39, %v166_v38  ;;  %v169_v42 = vld [vmem:[#allocation4 + $0x58] sm:$0xff]  ;;  %v170_v44 = vld [vmem:[#allocation4 + $0x60] sm:$0xff]  ;;  %v171_v45 = vld [vmem:[#allocation4 + $0x68] sm:$0xff] }
  0x30   :  { %v424_v43 = vpack.c.bf16 %v169_v42, %v168_v41  ;;  %v428_v46 = vpack.c.bf16 %v171_v45, %v170_v44  ;;  %v172_v47 = vld [vmem:[#allocation4 + $0x70] sm:$0xff]  ;;  %v173_v48 = vld [vmem:[#allocation4 + $0x78] sm:$0xff]  ;;  %v264_v50 = vld [vmem:[%s570_s2] ss:$0 sm:$0xff] }
  0x31   :  { %383 = vmatpush3.bf16.msra.mxu0 %v380_v8  ;;  %411 = vmatpush3.bf16.msra.mxu1 %v408_v17  ;;  %v432_v49 = vpack.c.bf16 %v173_v48, %v172_v47  ;;  %v265_v1 = vld [vmem:[%s572_s4] ss:$0 sm:$0xff] }
  0x32   :  { %385 = vmatprep.subr.bf16.mxu0 %v384_v20  ;;  %413 = vmatprep.subr.bf16.mxu1 %v412_v23 }
  0x35   :  { %387 = vmatpush3.bf16.msra.mxu0 %v384_v20  ;;  %415 = vmatpush3.bf16.msra.mxu1 %v412_v23 }
  0x36   :  { %389 = vmatprep.subr.bf16.mxu0 %v388_v24  ;;  %417 = vmatprep.subr.bf16.mxu1 %v416_v37 }
  0x39   :  { %391 = vmatpush3.bf16.msra.mxu0 %v388_v24  ;;  %419 = vmatpush3.bf16.msra.mxu1 %v416_v37 }
  0x3a   :  { %393 = vmatprep.subr.bf16.mxu0 %v392_v27  ;;  %421 = vmatprep.subr.bf16.mxu1 %v420_v40 }
  0x3d   :  { %395 = vmatpush3.bf16.msra.mxu0 %v392_v27  ;;  %423 = vmatpush3.bf16.msra.mxu1 %v420_v40 }
  0x3e   :  { %397 = vmatprep.subr.bf16.mxu0 %v396_v30  ;;  %425 = vmatprep.subr.bf16.mxu1 %v424_v43 }
  0x41   :  { %399 = vmatpush3.bf16.msra.mxu0 %v396_v30  ;;  %427 = vmatpush3.bf16.msra.mxu1 %v424_v43 }
  0x42   :  { %401 = vmatprep.subr.bf16.mxu0 %v400_v33  ;;  %429 = vmatprep.subr.bf16.mxu1 %v428_v46 }
  0x45   :  { %403 = vmatpush3.bf16.msra.mxu0 %v400_v33  ;;  %431 = vmatpush3.bf16.msra.mxu1 %v428_v46 }
  0x46   :  { %433 = vmatprep.subr.bf16.mxu1 %v432_v49 }
  0x48   :  { %335 = vmatmul.mubr.f32.vlgmr.msra.gmra.mrb[0].mxu0 %v49_v34 }
  0x49   :  { %435 = vmatpush3.bf16.msra.mxu1 %v432_v49 }
 0x11b   :  { %v336_v51 = vpop.f32.mrb[0].mxu0 }
 0x11c   :  { %v145_v52 = vadd.f32 %v336_v51, %v264_v50  ;;  %v139_v53 = vpop.f32.mrb[1].mxu0 }
 0x11d   :  { %v140_v54 = vadd.f32 %v264_v50, %v139_v53 }
 0x11e   :  { %v151_v55 = vmul.f32 0.70710677, %v145_v52  ;;  %v149_v62 = vmul.f32 0.5, %v145_v52 }
 0x11f   :  { %v150_v56 = vmul.f32 0.70710677, %v140_v54  ;;  %v148_v60 = vmul.f32 0.5, %v140_v54 }
 0x120   :  { %440 = verf.f32 %v151_v55 }
 0x121   :  { %442 = verf.f32 %v150_v56 }
 0x12a   :  { %v441_v57 = vpop.eup %440 }
 0x12b   :  { %v443_v58 = vpop.eup %442  ;;  %v155_v59 = vadd.f32 1.0, %v441_v57 }
 0x12c   :  { %v154_v61 = vadd.f32 1.0, %v443_v58 }
 0x12d   :  { %v157_v0 = vmul.f32 %v155_v59, %v149_v62 }
 0x12e   :  { %v156_v63 = vmul.f32 %v154_v61, %v148_v60 }
 0x130   :  { %369 = vmatprep.mubr.f32.mxu1 %v156_v63 }
 0x131   :  { %370 = vmatmul.mubr.f32.vlgmr.msra.gmra.mrb[0].mxu1 %v157_v0 }
 0x204   :  { %v371_v2 = vpop.f32.mrb[0].mxu1 }
 0x205   :  { %v253_v3 = vadd.f32 %v371_v2, %v265_v1  ;;  %v247_v4 = vpop.f32.mrb[1].mxu1 }
 0x206   :  { %v248_v5 = vadd.f32 %v265_v1, %v247_v4 }
 0x207   :  { %257 = vst [vmem:[%s573_s5 + $0x8] sm:$0xff] %v253_v3 }
 0x208   :  { %256 = vst [vmem:[%s573_s5] sm:$0xff] %v248_v5 }
 0x209   :  { %262 = vsyncpa [#allocation3], 1 }
 0x20a   :  { %263 = vsyncpa [#allocation5], 1 }

</bundles_post_ra>
